<compile_context>
chip_gen: v5e
topology: v5e:2x2
jax: 0.10.0
libtpu: 0.0.40
codegen_flags: <defaults>
</compile_context>

<pallas_src>
import functools

import jax
import jax.numpy as jnp
from jax.experimental import pallas as pl
from jax.experimental.pallas import tpu as pltpu


def _round_up(x, m):
    return ((x + m - 1) // m) * m


def _fused_conv_bn_relu_kernel(x_ref, w_ref, scale_ref, bias_ref, o_ref, *,
                               shifts, chunk):
    # x_ref    : (C, LX)        bf16  zero-padded, flattened padded image (lane = flat spatial)
    # w_ref    : (KH*KW, O, C)  bf16  one [O, C] tap matrix per (kh, kw)
    # scale_ref: (O, 1)         f32   BN scale = gamma / sqrt(var + eps)
    # bias_ref : (O, 1)         f32   BN bias  = beta - mean * scale
    # o_ref    : (O, LP)        bf16  lane-dense extended (stride-1, full-padded-width) output
    scale = scale_ref[...]
    bias = bias_ref[...]
    o_dim, lp = o_ref.shape

    for m0 in range(0, lp, chunk):                 # static lane-tile loop
        tm = min(chunk, lp - m0)
        acc = jnp.zeros((o_dim, tm), jnp.float32)
        for idx, d in enumerate(shifts):           # static loop over the KH*KW taps
            acc = acc + jnp.dot(
                w_ref[idx],                                   # [O, C]
                x_ref[:, d + m0: d + m0 + tm],                # [C, TM] shifted window
                preferred_element_type=jnp.float32,
            )
        y = acc * scale + bias                     # BN epilogue in f32
        o_ref[:, m0: m0 + tm] = jnp.maximum(y, 0.0).astype(o_ref.dtype)


def _fused_conv_call(x_flat, w_taps, scale, bias, *, shifts, lp, out_dtype):
    n, c, lx = x_flat.shape
    khkw, o, _ = w_taps.shape
    chunk = min(lp, 2048)                          # bounds the f32 accumulator temp

    # VMEM budget: double-buffered x / y blocks + (constant) weights/scale/bias +
    # accumulator and shifted-slice temporaries.  Only raise the scoped limit when
    # actually needed; stay well under v7x's 64 MiB physical VMEM.
    est = (2 * (c * lx * 2 + o * lp * 2)
           + 2 * (khkw * o * c * 2 + 2 * o * 4)
           + 3 * (o * chunk * 4 + c * chunk * 2))
    vmem_limit = None
    if est > (12 << 20):
        vmem_limit = min(int(est * 3 // 2) + (8 << 20), 60 << 20)

    kernel = functools.partial(_fused_conv_bn_relu_kernel, shifts=shifts, chunk=chunk)
    return pl.pallas_call(
        kernel,
        out_shape=jax.ShapeDtypeStruct((n, o, lp), out_dtype),
        grid_spec=pltpu.PrefetchScalarGridSpec(
            num_scalar_prefetch=0,
            grid=(n,),                                               # one step per image
            in_specs=[
                pl.BlockSpec((None, c, lx), lambda i: (i, 0, 0)),    # per-image activations
                pl.BlockSpec((khkw, o, c), lambda i: (0, 0, 0)),     # weights (resident)
                pl.BlockSpec((o, 1), lambda i: (0, 0)),              # BN scale
                pl.BlockSpec((o, 1), lambda i: (0, 0)),              # BN bias
            ],
            out_specs=pl.BlockSpec((None, o, lp), lambda i: (i, 0, 0)),
        ),
        compiler_params=pltpu.CompilerParams(
            dimension_semantics=("parallel",),
            vmem_limit_bytes=vmem_limit,
        ),
    )(x_flat, w_taps, scale, bias)


def basic_conv2d(x, weight, gamma, beta, running_mean, running_var, *,
                 stride, padding, eps=1e-5, out_dtype=jnp.bfloat16):
    """Forward of BasicConv2d. x: NCHW f32, weight: [O, C, KH, KW]. Returns NCHW (bf16)."""
    n, c, h, w = x.shape
    o, c_w, kh, kw = weight.shape
    assert c_w == c

    hp, wp = h + 2 * padding, w + 2 * padding
    oh1, ow1 = hp - kh + 1, wp - kw + 1                 # stride-1 output grid
    oh = (hp - kh) // stride + 1
    ow = (wp - kw) // stride + 1

    lext = oh1 * wp                                     # extended (full padded-width) length
    lp = _round_up(max(lext, 128), 128)                 # lane-dense output length
    dmax = (kh - 1) * wp + (kw - 1)                     # largest tap shift
    lx = _round_up(lp + dmax, 128)                      # flat activation length (in-bounds reads)

    # Activations: cast to bf16 ONCE, zero-pad spatially, flatten (h, w) into one lane axis.
    x_pad = jnp.pad(x.astype(jnp.bfloat16),
                    ((0, 0), (0, 0), (padding, padding), (padding, padding)))
    x_flat = x_pad.reshape(n, c, hp * wp)
    x_flat = jnp.pad(x_flat, ((0, 0), (0, 0), (0, lx - hp * wp)))

    # Weights: one [O, C] matrix per (kh, kw) tap, bf16 (BN scale NOT folded — see epilogue).
    w_taps = weight.reshape(o, c, kh * kw).transpose(2, 0, 1).astype(jnp.bfloat16)

    # BN (eval mode) as an f32 scale/bias epilogue inside the kernel.
    scale = (gamma / jnp.sqrt(running_var + eps)).astype(jnp.float32)
    bias = (beta - running_mean * scale).astype(jnp.float32)

    shifts = tuple(i * wp + j for i in range(kh) for j in range(kw))

    y_ext = _fused_conv_call(x_flat, w_taps,
                             scale.reshape(o, 1), bias.reshape(o, 1),
                             shifts=shifts, lp=lp, out_dtype=out_dtype)   # [N, O, LP]

    # [N, O, LP] -> NCHW: slice + reshape only, no transpose of the big tensor.
    y = y_ext[:, :, :lext].reshape(n, o, oh1, wp)
    y = y[:, :, ::stride, ::stride][:, :, :oh, :ow]
    return y


def _reference(x, weight, gamma, beta, running_mean, running_var, *,
               stride, padding, eps=1e-5):
    y = jax.lax.conv_general_dilated(
        x, weight,
        window_strides=(stride, stride),
        padding=((padding, padding), (padding, padding)),
        dimension_numbers=("NCHW", "OIHW", "NCHW"),
    )
    scale = gamma / jnp.sqrt(running_var + eps)
    bias = beta - running_mean * scale
    y = y * scale[None, :, None, None] + bias[None, :, None, None]
    return jnp.maximum(y, 0.0)


if __name__ == "__main__":
    # Module config: in_planes=4, out_planes=8, kernel_size=3, stride=1, padding=1
    N, C_IN, H, W = 2, 4, 16, 16
    C_OUT, KH, KW = 8, 3, 3
    STRIDE, PAD = 1, 1

    key = jax.random.PRNGKey(0)
    k_x, k_w, k_g, k_b, k_m, k_v = jax.random.split(key, 6)

    x = jax.random.normal(k_x, (N, C_IN, H, W), dtype=jnp.float32)
    weight = jax.random.normal(k_w, (C_OUT, C_IN, KH, KW), dtype=jnp.float32) * 0.1
    gamma = 1.0 + 0.1 * jax.random.normal(k_g, (C_OUT,), dtype=jnp.float32)
    beta = 0.1 * jax.random.normal(k_b, (C_OUT,), dtype=jnp.float32)
    running_mean = 0.1 * jax.random.normal(k_m, (C_OUT,), dtype=jnp.float32)
    running_var = jnp.abs(jax.random.normal(k_v, (C_OUT,), dtype=jnp.float32)) + 0.5

    fwd = functools.partial(basic_conv2d, stride=STRIDE, padding=PAD)
    out = jax.jit(fwd)(x, weight, gamma, beta, running_mean, running_var)
    out = jax.block_until_ready(out)

    ref = _reference(x, weight, gamma, beta, running_mean, running_var,
                     stride=STRIDE, padding=PAD)
    assert out.shape == (N, C_OUT, H, W), out.shape
    # bf16 MXU operands + bf16 output (f32 accumulation): loosened tolerance.
    assert jnp.allclose(out.astype(jnp.float32), ref, atol=3e-2, rtol=3e-2), \
        float(jnp.max(jnp.abs(out.astype(jnp.float32) - ref)))

    print("KERNEL_OK")
</pallas_src>

<mosaic_0001>
module attributes {stable_mosaic.version = 11 : i64} {
  func.func @_fused_conv_bn_relu_kernel(%arg0: i32, %arg1: memref<1x4x512xbf16, #tpu.memory_space<vmem>>, %arg2: memref<9x8x4xbf16, #tpu.memory_space<vmem>>, %arg3: memref<8x1xf32, #tpu.memory_space<vmem>>, %arg4: memref<8x1xf32, #tpu.memory_space<vmem>>, %arg5: memref<1x8x384xbf16, #tpu.memory_space<vmem>>) attributes {dimension_semantics = [#tpu.dimension_semantics<parallel>], iteration_bounds = array<i64: 2>, scalar_prefetch = 0 : i64, scratch_operands = 0 : i64, tpu.core_type = #tpu.core_type<tc>, window_params = [{transform_indices = @transform_0, window_bounds = array<i64: 1, 4, 512>}, {pipeline_mode = #tpu.pipeline_mode<synchronous>, transform_indices = @transform_1, window_bounds = array<i64: 9, 8, 4>}, {pipeline_mode = #tpu.pipeline_mode<synchronous>, transform_indices = @transform_2, window_bounds = array<i64: 8, 1>}, {pipeline_mode = #tpu.pipeline_mode<synchronous>, transform_indices = @transform_3, window_bounds = array<i64: 8, 1>}, {transform_indices = @transform_4, window_bounds = array<i64: 1, 8, 384>}]} {
    %c0 = arith.constant 0 : index
    %c0_0 = arith.constant 0 : index
    %0 = vector.load %arg3[%c0, %c0_0] : memref<8x1xf32, #tpu.memory_space<vmem>>, vector<8x1xf32>
    %c0_1 = arith.constant 0 : index
    %c0_2 = arith.constant 0 : index
    %1 = vector.load %arg4[%c0_1, %c0_2] : memref<8x1xf32, #tpu.memory_space<vmem>>, vector<8x1xf32>
    %cst = arith.constant 0.000000e+00 : f32
    %2 = vector.broadcast %cst : f32 to vector<8x384xf32>
    %c0_3 = arith.constant 0 : index
    %c0_4 = arith.constant 0 : index
    %c0_5 = arith.constant 0 : index
    %3 = vector.load %arg2[%c0_3, %c0_4, %c0_5] : memref<9x8x4xbf16, #tpu.memory_space<vmem>>, vector<1x8x4xbf16>
    %4 = vector.shape_cast %3 : vector<1x8x4xbf16> to vector<8x4xbf16>
    %c0_6 = arith.constant 0 : index
    %c0_7 = arith.constant 0 : index
    %c0_8 = arith.constant 0 : index
    %5 = vector.load %arg1[%c0_6, %c0_7, %c0_8] : memref<1x4x512xbf16, #tpu.memory_space<vmem>>, vector<1x4x384xbf16>
    %6 = vector.shape_cast %5 : vector<1x4x384xbf16> to vector<4x384xbf16>
    %cst_9 = arith.constant dense<0.000000e+00> : vector<8x384xf32>
    %7 = tpu.matmul %4, %6, %cst_9 {dimension_numbers = #tpu.dot_dimension_numbers<[1], [0], [0], [1], [0, 0, 1, 1], [], []>} : vector<8x4xbf16>, vector<4x384xbf16>, vector<8x384xf32> -> vector<8x384xf32>
    %8 = arith.addf %2, %7 : vector<8x384xf32>
    %c1 = arith.constant 1 : index
    %c0_10 = arith.constant 0 : index
    %c0_11 = arith.constant 0 : index
    %9 = vector.load %arg2[%c1, %c0_10, %c0_11] : memref<9x8x4xbf16, #tpu.memory_space<vmem>>, vector<1x8x4xbf16>
    %10 = vector.shape_cast %9 : vector<1x8x4xbf16> to vector<8x4xbf16>
    %c0_12 = arith.constant 0 : index
    %c0_13 = arith.constant 0 : index
    %c1_14 = arith.constant 1 : index
    %11 = vector.load %arg1[%c0_12, %c0_13, %c1_14] : memref<1x4x512xbf16, #tpu.memory_space<vmem>>, vector<1x4x384xbf16>
    %12 = vector.shape_cast %11 : vector<1x4x384xbf16> to vector<4x384xbf16>
    %cst_15 = arith.constant dense<0.000000e+00> : vector<8x384xf32>
    %13 = tpu.matmul %10, %12, %cst_15 {dimension_numbers = #tpu.dot_dimension_numbers<[1], [0], [0], [1], [0, 0, 1, 1], [], []>} : vector<8x4xbf16>, vector<4x384xbf16>, vector<8x384xf32> -> vector<8x384xf32>
    %14 = arith.addf %8, %13 : vector<8x384xf32>
    %c2 = arith.constant 2 : index
    %c0_16 = arith.constant 0 : index
    %c0_17 = arith.constant 0 : index
    %15 = vector.load %arg2[%c2, %c0_16, %c0_17] : memref<9x8x4xbf16, #tpu.memory_space<vmem>>, vector<1x8x4xbf16>
    %16 = vector.shape_cast %15 : vector<1x8x4xbf16> to vector<8x4xbf16>
    %c0_18 = arith.constant 0 : index
    %c0_19 = arith.constant 0 : index
    %c2_20 = arith.constant 2 : index
    %17 = vector.load %arg1[%c0_18, %c0_19, %c2_20] : memref<1x4x512xbf16, #tpu.memory_space<vmem>>, vector<1x4x384xbf16>
    %18 = vector.shape_cast %17 : vector<1x4x384xbf16> to vector<4x384xbf16>
    %cst_21 = arith.constant dense<0.000000e+00> : vector<8x384xf32>
    %19 = tpu.matmul %16, %18, %cst_21 {dimension_numbers = #tpu.dot_dimension_numbers<[1], [0], [0], [1], [0, 0, 1, 1], [], []>} : vector<8x4xbf16>, vector<4x384xbf16>, vector<8x384xf32> -> vector<8x384xf32>
    %20 = arith.addf %14, %19 : vector<8x384xf32>
    %c3 = arith.constant 3 : index
    %c0_22 = arith.constant 0 : index
    %c0_23 = arith.constant 0 : index
    %21 = vector.load %arg2[%c3, %c0_22, %c0_23] : memref<9x8x4xbf16, #tpu.memory_space<vmem>>, vector<1x8x4xbf16>
    %22 = vector.shape_cast %21 : vector<1x8x4xbf16> to vector<8x4xbf16>
    %c0_24 = arith.constant 0 : index
    %c0_25 = arith.constant 0 : index
    %c18 = arith.constant 18 : index
    %23 = vector.load %arg1[%c0_24, %c0_25, %c18] : memref<1x4x512xbf16, #tpu.memory_space<vmem>>, vector<1x4x384xbf16>
    %24 = vector.shape_cast %23 : vector<1x4x384xbf16> to vector<4x384xbf16>
    %cst_26 = arith.constant dense<0.000000e+00> : vector<8x384xf32>
    %25 = tpu.matmul %22, %24, %cst_26 {dimension_numbers = #tpu.dot_dimension_numbers<[1], [0], [0], [1], [0, 0, 1, 1], [], []>} : vector<8x4xbf16>, vector<4x384xbf16>, vector<8x384xf32> -> vector<8x384xf32>
    %26 = arith.addf %20, %25 : vector<8x384xf32>
    %c4 = arith.constant 4 : index
    %c0_27 = arith.constant 0 : index
    %c0_28 = arith.constant 0 : index
    %27 = vector.load %arg2[%c4, %c0_27, %c0_28] : memref<9x8x4xbf16, #tpu.memory_space<vmem>>, vector<1x8x4xbf16>
    %28 = vector.shape_cast %27 : vector<1x8x4xbf16> to vector<8x4xbf16>
    %c0_29 = arith.constant 0 : index
    %c0_30 = arith.constant 0 : index
    %c19 = arith.constant 19 : index
    %29 = vector.load %arg1[%c0_29, %c0_30, %c19] : memref<1x4x512xbf16, #tpu.memory_space<vmem>>, vector<1x4x384xbf16>
    %30 = vector.shape_cast %29 : vector<1x4x384xbf16> to vector<4x384xbf16>
    %cst_31 = arith.constant dense<0.000000e+00> : vector<8x384xf32>
    %31 = tpu.matmul %28, %30, %cst_31 {dimension_numbers = #tpu.dot_dimension_numbers<[1], [0], [0], [1], [0, 0, 1, 1], [], []>} : vector<8x4xbf16>, vector<4x384xbf16>, vector<8x384xf32> -> vector<8x384xf32>
    %32 = arith.addf %26, %31 : vector<8x384xf32>
    %c5 = arith.constant 5 : index
    %c0_32 = arith.constant 0 : index
    %c0_33 = arith.constant 0 : index
    %33 = vector.load %arg2[%c5, %c0_32, %c0_33] : memref<9x8x4xbf16, #tpu.memory_space<vmem>>, vector<1x8x4xbf16>
    %34 = vector.shape_cast %33 : vector<1x8x4xbf16> to vector<8x4xbf16>
    %c0_34 = arith.constant 0 : index
    %c0_35 = arith.constant 0 : index
    %c20 = arith.constant 20 : index
    %35 = vector.load %arg1[%c0_34, %c0_35, %c20] : memref<1x4x512xbf16, #tpu.memory_space<vmem>>, vector<1x4x384xbf16>
    %36 = vector.shape_cast %35 : vector<1x4x384xbf16> to vector<4x384xbf16>
    %cst_36 = arith.constant dense<0.000000e+00> : vector<8x384xf32>
    %37 = tpu.matmul %34, %36, %cst_36 {dimension_numbers = #tpu.dot_dimension_numbers<[1], [0], [0], [1], [0, 0, 1, 1], [], []>} : vector<8x4xbf16>, vector<4x384xbf16>, vector<8x384xf32> -> vector<8x384xf32>
    %38 = arith.addf %32, %37 : vector<8x384xf32>
    %c6 = arith.constant 6 : index
    %c0_37 = arith.constant 0 : index
    %c0_38 = arith.constant 0 : index
    %39 = vector.load %arg2[%c6, %c0_37, %c0_38] : memref<9x8x4xbf16, #tpu.memory_space<vmem>>, vector<1x8x4xbf16>
    %40 = vector.shape_cast %39 : vector<1x8x4xbf16> to vector<8x4xbf16>
    %c0_39 = arith.constant 0 : index
    %c0_40 = arith.constant 0 : index
    %c36 = arith.constant 36 : index
    %41 = vector.load %arg1[%c0_39, %c0_40, %c36] : memref<1x4x512xbf16, #tpu.memory_space<vmem>>, vector<1x4x384xbf16>
    %42 = vector.shape_cast %41 : vector<1x4x384xbf16> to vector<4x384xbf16>
    %cst_41 = arith.constant dense<0.000000e+00> : vector<8x384xf32>
    %43 = tpu.matmul %40, %42, %cst_41 {dimension_numbers = #tpu.dot_dimension_numbers<[1], [0], [0], [1], [0, 0, 1, 1], [], []>} : vector<8x4xbf16>, vector<4x384xbf16>, vector<8x384xf32> -> vector<8x384xf32>
    %44 = arith.addf %38, %43 : vector<8x384xf32>
    %c7 = arith.constant 7 : index
    %c0_42 = arith.constant 0 : index
    %c0_43 = arith.constant 0 : index
    %45 = vector.load %arg2[%c7, %c0_42, %c0_43] : memref<9x8x4xbf16, #tpu.memory_space<vmem>>, vector<1x8x4xbf16>
    %46 = vector.shape_cast %45 : vector<1x8x4xbf16> to vector<8x4xbf16>
    %c0_44 = arith.constant 0 : index
    %c0_45 = arith.constant 0 : index
    %c37 = arith.constant 37 : index
    %47 = vector.load %arg1[%c0_44, %c0_45, %c37] : memref<1x4x512xbf16, #tpu.memory_space<vmem>>, vector<1x4x384xbf16>
    %48 = vector.shape_cast %47 : vector<1x4x384xbf16> to vector<4x384xbf16>
    %cst_46 = arith.constant dense<0.000000e+00> : vector<8x384xf32>
    %49 = tpu.matmul %46, %48, %cst_46 {dimension_numbers = #tpu.dot_dimension_numbers<[1], [0], [0], [1], [0, 0, 1, 1], [], []>} : vector<8x4xbf16>, vector<4x384xbf16>, vector<8x384xf32> -> vector<8x384xf32>
    %50 = arith.addf %44, %49 : vector<8x384xf32>
    %c8 = arith.constant 8 : index
    %c0_47 = arith.constant 0 : index
    %c0_48 = arith.constant 0 : index
    %51 = vector.load %arg2[%c8, %c0_47, %c0_48] : memref<9x8x4xbf16, #tpu.memory_space<vmem>>, vector<1x8x4xbf16>
    %52 = vector.shape_cast %51 : vector<1x8x4xbf16> to vector<8x4xbf16>
    %c0_49 = arith.constant 0 : index
    %c0_50 = arith.constant 0 : index
    %c38 = arith.constant 38 : index
    %53 = vector.load %arg1[%c0_49, %c0_50, %c38] : memref<1x4x512xbf16, #tpu.memory_space<vmem>>, vector<1x4x384xbf16>
    %54 = vector.shape_cast %53 : vector<1x4x384xbf16> to vector<4x384xbf16>
    %cst_51 = arith.constant dense<0.000000e+00> : vector<8x384xf32>
    %55 = tpu.matmul %52, %54, %cst_51 {dimension_numbers = #tpu.dot_dimension_numbers<[1], [0], [0], [1], [0, 0, 1, 1], [], []>} : vector<8x4xbf16>, vector<4x384xbf16>, vector<8x384xf32> -> vector<8x384xf32>
    %56 = arith.addf %50, %55 : vector<8x384xf32>
    %57 = vector.broadcast %0 : vector<8x1xf32> to vector<8x384xf32>
    %58 = arith.mulf %56, %57 : vector<8x384xf32>
    %59 = vector.broadcast %1 : vector<8x1xf32> to vector<8x384xf32>
    %60 = arith.addf %58, %59 : vector<8x384xf32>
    %cst_52 = arith.constant 0.000000e+00 : f32
    %61 = vector.broadcast %cst_52 : f32 to vector<8x384xf32>
    %62 = arith.maximumf %60, %61 : vector<8x384xf32>
    %63 = arith.truncf %62 : vector<8x384xf32> to vector<8x384xbf16>
    %c0_53 = arith.constant 0 : index
    %c0_54 = arith.constant 0 : index
    %c0_55 = arith.constant 0 : index
    %64 = vector.load %arg5[%c0_53, %c0_54, %c0_55] : memref<1x8x384xbf16, #tpu.memory_space<vmem>>, vector<1x8x384xbf16>
    %65 = vector.shape_cast %64 : vector<1x8x384xbf16> to vector<8x384xbf16>
    %66 = vector.shape_cast %63 : vector<8x384xbf16> to vector<1x8x384xbf16>
    tpu.vector_store %arg5[%c0_53, %c0_54, %c0_55], %66 {strides = array<i32>} : memref<1x8x384xbf16, #tpu.memory_space<vmem>>, vector<1x8x384xbf16>,
    return
  }
  func.func @transform_0(%arg0: i32) -> (i32, i32, i32) {
    %c0_i32 = arith.constant 0 : i32
    %c0_i32_0 = arith.constant 0 : i32
    %c0_i32_1 = arith.constant 0 : i32
    return %arg0, %c0_i32, %c0_i32_0 : i32, i32, i32
  }
  func.func @transform_1(%arg0: i32) -> (i32, i32, i32) {
    %c0_i32 = arith.constant 0 : i32
    %c0_i32_0 = arith.constant 0 : i32
    %c0_i32_1 = arith.constant 0 : i32
    %c0_i32_2 = arith.constant 0 : i32
    return %c0_i32, %c0_i32_0, %c0_i32_1 : i32, i32, i32
  }
  func.func @transform_2(%arg0: i32) -> (i32, i32) {
    %c0_i32 = arith.constant 0 : i32
    %c0_i32_0 = arith.constant 0 : i32
    %c0_i32_1 = arith.constant 0 : i32
    return %c0_i32, %c0_i32_0 : i32, i32
  }
  func.func @transform_3(%arg0: i32) -> (i32, i32) {
    %c0_i32 = arith.constant 0 : i32
    %c0_i32_0 = arith.constant 0 : i32
    %c0_i32_1 = arith.constant 0 : i32
    return %c0_i32, %c0_i32_0 : i32, i32
  }
  func.func @transform_4(%arg0: i32) -> (i32, i32, i32) {
    %c0_i32 = arith.constant 0 : i32
    %c0_i32_0 = arith.constant 0 : i32
    %c0_i32_1 = arith.constant 0 : i32
    return %arg0, %c0_i32, %c0_i32_0 : i32, i32, i32
  }
}

</mosaic_0001>

<bundles_post_ra>
// kernel: basic_conv2d.1
= control target key start
LH: loop header
LB: loop body
LE: loop exit
PB: predicated region body
PF: predicated region fallthrough
CT: control target
= control target key end

     0   :  { %s1073_s15 = smov 0   ;;  %s1215_s0 = inlined_call_operand.vmem [shape: bf16[2,4,512], index: 0, kind: input, shape index: {}]   ;;  %s1216_s1 = inlined_call_operand.vmem [shape: bf16[9,8,4], index: 1, kind: input, shape index: {}]   ;;  %s1217_s2 = inlined_call_operand.vmem [shape: f32[8,1], index: 2, kind: input, shape index: {}]   ;;  %s1218_s3 = inlined_call_operand.vmem [shape: f32[8,1], index: 3, kind: input, shape index: {}]   ;;  %s1219_s4 = inlined_call_operand.vmem [shape: bf16[2,8,384], index: 4, kind: output, shape index: {}]  }
   0x1 LB: > { %s965_s16 = sadd.s32 4294967295, %s1037_s15   ;;  %p969_p0 = scmp.ge.s32.totalorder %s1037_s15, 1  ;;  %s1037_s15 = sphi %s1073_s15, %s14_s15  }
   0x2   : > { %p162_p1 = scmp.lt.s32.totalorder %s1037_s15, 3 }
   0x4   : > { %p163_p2 = pnand %p969_p0, %p162_p1 }
   0x5   : > { %p188_p3 = scmp.lt.s32.totalorder (!%p163_p2), %s965_s16, 1  ;;  %s1039_s21 = smov (!%p163_p2), 127  }
   0x6   : > { %166 = sbr.rel (%p163_p2) target bundleno = 393 (0x189), region = 36  ;;  %s1040_s22 = smov (!%p163_p2), 126  }
   0x7   : > { %s1041_s23 = smov (!%p163_p2), 110   ;;  %s1042_s24 = smov (!%p163_p2), 109  }
   0x8   : > { %s1043_s25 = smov (!%p163_p2), 108   ;;  %s1044_s26 = smov (!%p163_p2), 92  }
   0x9   : > { %s1045_s27 = smov (!%p163_p2), 91   ;;  %s1046_s28 = smov (!%p163_p2), 90  }
   0xb   : > { %s1221_s16 = smov (!%p188_p3, %s965_s16), 1  ;;  %vm232_vm0 = vcmask 1041408   ;;  %v201_v38 = vld [vmem:[%s1216_s1] sm:$0xf]  ;;  %vm228_vm1 = vcmask 31744   ;;  %vm355_vm2 = vcmask 1031168  }
   0xc   : > { %s1010_s17 = sshll.u32 %s1221_s16, 3  ;;  %vm224_vm3 = vcmask 1039360   ;;  %v973_v55 = vld [vmem:[%s1216_s1 + $0x4] sm:$0xf]  ;;  %vm434_vm4 = vcmask 900096   ;;  %vm513_vm5 = vcmask 891904  }
   0xd   : > { %s192_s20 = scalar_lea.vmem %s1215_s0, %s1010_s17  ;;  %v980_v62 = vld [vmem:[%s1216_s1 + $0x8] sm:$0xf]  ;;  %vm592_vm6 = vcmask 883712   ;;  %vm671_vm7 = vcmask 752640   ;;  %vm750_vm8 = vcmask 744448   ;;  %vm829_vm9 = vcmask 736256  }
   0xe   : > { %v1087_v0 = vld [vmem:[%s192_s20] sm:$0xff] }
   0xf   : > { %207 = vst [vmem:[#allocation1] ss:$4 sm:$0xff] %v1087_v0  ;;  %v202_v1 = vld [vmem:[%s192_s20] sm:$0x3f] }
  0x16   : > { %v212_v2 = vld.sshfl [vmem:[#allocation1 + $0x10] sm:$0xff pattern:$0x73625140]  ;;  %v208_v3 = vld.sshfl [vmem:[#allocation1] sm:$0xff pattern:$0x73625140] }
  0x17   : > { %220 = vrot.lane.b32.xlu0 %v212_v2, %s1039_s21  ;;  %216 = vrot.lane.b32.xlu1 %v208_v3, %s1039_s21  ;;  %v214_v4 = vld.sshfl [vmem:[#allocation1 + $0x18] sm:$0xff pattern:$0x73625140]  ;;  %v210_v5 = vld.sshfl [vmem:[#allocation1 + $0x8] sm:$0xff pattern:$0x73625140] }
  0x18   : > { %282 = vst [vmem:[#allocation1] ss:$4 sm:$0xff] %v202_v1 }
  0x1f   : > { %222 = vrot.lane.b32.xlu0 %v214_v4, %s1039_s21  ;;  %218 = vrot.lane.b32.xlu1 %v210_v5, %s1039_s21  ;;  %v1090_v6 = vld.sshfl [vmem:[#allocation1] sm:$0xff pattern:$0x73625140]  ;;  %v1092_v7 = vld.sshfl [vmem:[#allocation1 + $0x8] sm:$0xff pattern:$0x73625140] }
  0x20   : > { %v1094_v8 = vld.sshfl [vmem:[#allocation1 + $0x10] sm:$0xff pattern:$0x73625140]  ;;  %v289_v35 = vsel %vm232_vm0, %v1090_v6, 0  ;;  %v291_v46 = vsel %vm232_vm0, %v1092_v7, 0 }
  0x21   : > { %338 = vst [vmem:[#allocation1] ss:$4 sm:$0xff] %v1087_v0  ;;  %302 = vmatpush.bf16.msra.mxu3 %v289_v35  ;;  %v293_v50 = vsel %vm232_vm0, %v1094_v8, 0 }
  0x24   : > { %977 = vmatmul.msk.bf16.vlgmr.msra.gmra.mxu3 %vm228_vm1, %v201_v38 }
  0x28   : > { %v341_v9 = vld.sshfl [vmem:[#allocation1 + $0x8] sm:$0xff pattern:$0x73625140]  ;;  %v345_v10 = vld.sshfl [vmem:[#allocation1 + $0x18] sm:$0xff pattern:$0x73625140] }
  0x29   : > { %v343_v11 = vld.sshfl [vmem:[#allocation1 + $0x10] sm:$0xff pattern:$0x73625140]  ;;  %v339_v12 = vld.sshfl [vmem:[#allocation1] sm:$0xff pattern:$0x73625140] }
  0x2a   : > { %351 = vrot.lane.b32.xlu0 %v343_v11, %s1040_s22  ;;  %347 = vrot.lane.b32.xlu2 %v339_v12, %s1040_s22  ;;  %417 = vst [vmem:[#allocation1] ss:$4 sm:$0xff] %v1087_v0  ;;  %v984_v12 = vld [vmem:[%s1216_s1 + $0xc] sm:$0xf] }
  0x31   : > { %v420_v13 = vld.sshfl [vmem:[#allocation1 + $0x8] sm:$0xff pattern:$0x73625140]  ;;  %v422_v14 = vld.sshfl [vmem:[#allocation1 + $0x10] sm:$0xff pattern:$0x73625140] }
  0x32   : > { %v424_v15 = vld.sshfl [vmem:[#allocation1 + $0x18] sm:$0xff pattern:$0x73625140]  ;;  %428 = vrot.lane.b32.xlu1 %v420_v13, %s1041_s23  ;;  %353 = vrot.lane.b32.xlu0 %v345_v10, %s1040_s22  ;;  %v418_v16 = vld.sshfl [vmem:[#allocation1] sm:$0xff pattern:$0x73625140] }
  0x33   : > { %349 = vrot.lane.b32.xlu2 %v341_v9, %s1040_s22  ;;  %496 = vst [vmem:[#allocation1] ss:$4 sm:$0xff] %v1087_v0 }
  0x3a   : > { %426 = vrot.lane.b32.xlu1 %v418_v16, %s1041_s23  ;;  %v501_v17 = vld.sshfl [vmem:[#allocation1 + $0x10] sm:$0xff pattern:$0x73625140]  ;;  %v497_v18 = vld.sshfl [vmem:[#allocation1] sm:$0xff pattern:$0x73625140] }
  0x3b   : > { %509 = vrot.lane.b32.xlu0 %v501_v17, %s1042_s24  ;;  %v503_v19 = vld.sshfl [vmem:[#allocation1 + $0x18] sm:$0xff pattern:$0x73625140]  ;;  %v499_v20 = vld.sshfl [vmem:[#allocation1 + $0x8] sm:$0xff pattern:$0x73625140]  ;;  %430 = vrot.lane.b32.xlu2 %v422_v14, %s1041_s23 }
  0x3c   : > { %575 = vst [vmem:[#allocation1] ss:$4 sm:$0xff] %v1087_v0 }
  0x42   : > { %511 = vrot.lane.b32.xlu1 %v503_v19, %s1042_s24 }
  0x43   : > { %507 = vrot.lane.b32.xlu0 %v499_v20, %s1042_s24  ;;  %v578_v21 = vld.sshfl [vmem:[#allocation1 + $0x8] sm:$0xff pattern:$0x73625140]  ;;  %v580_v22 = vld.sshfl [vmem:[#allocation1 + $0x10] sm:$0xff pattern:$0x73625140]  ;;  %432 = vrot.lane.b32.xlu2 %v424_v15, %s1041_s23 }
  0x44   : > { %v582_v23 = vld.sshfl [vmem:[#allocation1 + $0x18] sm:$0xff pattern:$0x73625140]  ;;  %v576_v24 = vld.sshfl [vmem:[#allocation1] sm:$0xff pattern:$0x73625140] }
  0x45   : > { %654 = vst [vmem:[#allocation1] ss:$4 sm:$0xff] %v1087_v0 }
  0x4a   : > { %584 = vrot.lane.b32.xlu1 %v576_v24, %s1043_s25 }
  0x4b   : > { %505 = vrot.lane.b32.xlu2 %v497_v18, %s1042_s24 }
  0x4c   : > { %v661_v25 = vld.sshfl [vmem:[#allocation1 + $0x18] sm:$0xff pattern:$0x73625140]  ;;  %v655_v26 = vld.sshfl [vmem:[#allocation1] sm:$0xff pattern:$0x73625140] }
  0x4d   : > { %663 = vrot.lane.b32.xlu0 %v655_v26, %s1044_s26  ;;  %v657_v27 = vld.sshfl [vmem:[#allocation1 + $0x8] sm:$0xff pattern:$0x73625140]  ;;  %v659_v28 = vld.sshfl [vmem:[#allocation1 + $0x10] sm:$0xff pattern:$0x73625140] }
  0x4e   : > { %733 = vst [vmem:[#allocation1] ss:$4 sm:$0xff] %v1087_v0 }
  0x52   : > { %665 = vrot.lane.b32.xlu1 %v657_v27, %s1044_s26 }
  0x53   : > { %586 = vrot.lane.b32.xlu2 %v578_v21, %s1043_s25 }
  0x55   : > { %590 = vrot.lane.b32.xlu0 %v582_v23, %s1043_s25  ;;  %v734_v29 = vld.sshfl [vmem:[#allocation1] sm:$0xff pattern:$0x73625140]  ;;  %v736_v30 = vld.sshfl [vmem:[#allocation1 + $0x8] sm:$0xff pattern:$0x73625140] }
  0x56   : > { %v738_v31 = vld.sshfl [vmem:[#allocation1 + $0x10] sm:$0xff pattern:$0x73625140]  ;;  %v740_v32 = vld.sshfl [vmem:[#allocation1 + $0x18] sm:$0xff pattern:$0x73625140] }
  0x57   : > { %812 = vst [vmem:[#allocation1] ss:$4 sm:$0xff] %v1087_v0 }
  0x5a   : > { %667 = vrot.lane.b32.xlu1 %v659_v28, %s1044_s26 }
  0x5b   : > { %588 = vrot.lane.b32.xlu2 %v580_v22, %s1043_s25 }
  0x5d   : > { %746 = vrot.lane.b32.xlu0 %v738_v31, %s1045_s27 }
  0x5e   : > { %v817_v33 = vld.sshfl [vmem:[#allocation1 + $0x10] sm:$0xff pattern:$0x73625140]  ;;  %v813_v34 = vld.sshfl [vmem:[#allocation1] sm:$0xff pattern:$0x73625140] }
  0x5f   : > { %v815_v36 = vld.sshfl [vmem:[#allocation1 + $0x8] sm:$0xff pattern:$0x73625140]  ;;  %v819_v37 = vld.sshfl [vmem:[#allocation1 + $0x18] sm:$0xff pattern:$0x73625140] }
  0x62   : > { %669 = vrot.lane.b32.xlu1 %v661_v25, %s1044_s26 }
  0x63   : > { %744 = vrot.lane.b32.xlu2 %v736_v30, %s1045_s27 }
  0x65   : > { %748 = vrot.lane.b32.xlu0 %v740_v32, %s1045_s27  ;;  %v988_v32 = vld [vmem:[%s1216_s1 + $0x10] sm:$0xf] }
  0x6a   : > { %825 = vrot.lane.b32.xlu1 %v817_v33, %s1046_s28 }
  0x6b   : > { %742 = vrot.lane.b32.xlu2 %v734_v29, %s1045_s27  ;;  %v992_v29 = vld [vmem:[%s1216_s1 + $0x14] sm:$0xf]  ;;  %s1011_s27 = smul.u32 12, %s1221_s16 }
  0x6d   : > { %821 = vrot.lane.b32.xlu0 %v813_v34, %s1046_s28  ;;  %s197_s30 = scalar_lea.vmem %s1219_s4, %s1011_s27 }
  0x72   : > { %823 = vrot.lane.b32.xlu1 %v815_v36, %s1046_s28 }
  0x73   : > { %827 = vrot.lane.b32.xlu2 %v819_v37, %s1046_s28 }
  0x84   : > { %v348_v39 = vpop.permute.xlu2 %347 }
  0x89   : > { %v221_v40 = vpop.permute.xlu0 %220  ;;  %v217_v41 = vpop.permute.xlu1 %216 }
  0x8d   : > { %v350_v42 = vpop.permute.xlu2 %349 }
  0x8e   : > { %v356_v43 = vsel %vm355_vm2, %v348_v39, %v350_v42 }
  0x8f   : > { %v363_v54 = vsel %vm232_vm0, %v356_v43, 0 }
  0x91   : > { %v223_v44 = vpop.permute.xlu0 %222  ;;  %v219_v45 = vpop.permute.xlu1 %218 }
  0x92   : > { %v225_v47 = vsel %vm224_vm3, %v217_v41, %v219_v45  ;;  %v226_v48 = vsel %vm224_vm3, %v219_v45, %v221_v40  ;;  %v227_v49 = vsel %vm224_vm3, %v221_v40, %v223_v44  ;;  %v996_v44 = vld [vmem:[%s1216_s1 + $0x18] sm:$0xf] }
  0x93   : > { %v234_v51 = vsel %vm232_vm0, %v225_v47, 0  ;;  %v237_v52 = vsel %vm232_vm0, %v226_v48, 0  ;;  %v240_v53 = vsel %vm232_vm0, %v227_v49, 0 }
  0x94   : > { %249 = vmatpush.bf16.msra.mxu0 %v234_v51  ;;  %262 = vmatpush.bf16.msra.mxu1 %v237_v52 }
  0x95   : > { %275 = vmatpush.bf16.msra.mxu2 %v240_v53  ;;  %v431_v56 = vpop.permute.xlu2 %430  ;;  %v200_v53 = vld [vmem:[%s1218_s3] sm:$0xff] }
  0x97   : > { %974 = vmatmul.msk.bf16.vlgmr.msra.gmra.mxu0 %vm228_vm1, %v973_v55  ;;  %975 = vmatmul.msk.bf16.vlgmr.msra.gmra.mxu1 %vm228_vm1, %v973_v55 }
  0x98   : > { %315 = vmatpush.bf16.msrb.mxu0 %v291_v46  ;;  %328 = vmatpush.bf16.msrb.mxu1 %v293_v50 }
  0x99   : > { %378 = vmatpush.bf16.msrb.mxu2 %v363_v54 }
  0x9a   : > { %976 = vmatmul.msk.bf16.vlgmr.msra.gmra.mxu2 %vm228_vm1, %v973_v55  ;;  %v1047_v55 = vmov 0  }
  0x9b   : > { %1030 = vset.pattern.permute.xlu0 %v1047_v55  ;;  %1029 = vset.pattern.permute.xlu2 %v1047_v55 }
  0x9c   : > { %v352_v57 = vpop.permute.xlu0 %351  ;;  %897 = vperm.xlu0 %1030, %v200_v53  }
  0x9d   : > { %v357_v58 = vsel %vm355_vm2, %v350_v42, %v352_v57  ;;  %v433_v59 = vpop.permute.xlu2 %432 }
  0x9e   : > { %v366_v60 = vsel %vm232_vm0, %v357_v58, 0  ;;  %v437_v61 = vsel %vm434_vm4, %v431_v56, %v433_v59  ;;  %v1000_v59 = vld [vmem:[%s1216_s1 + $0x1c] sm:$0xf] }
  0x9f   : > { %391 = vmatpush.bf16.msrb.mxu3 %v366_v60  ;;  %v448_v63 = vsel %vm232_vm0, %v437_v61, 0 }
  0xa2   : > { %982 = vmatmul.msk.bf16.vlgmr.msrb.gmra.mxu3 %vm228_vm1, %v980_v62 }
  0xa3   : > { %483 = vmatpush.bf16.msra.mxu3 %v448_v63 }
  0xa4   : > { %v429_v0 = vpop.permute.xlu1 %428  ;;  %v354_v1 = vpop.permute.xlu0 %353 }
  0xa5   : > { %v436_v2 = vsel %vm434_vm4, %v429_v0, %v431_v56  ;;  %v358_v3 = vsel %vm355_vm2, %v352_v57, %v354_v1  ;;  %v506_v4 = vpop.permute.xlu2 %505 }
  0xa6   : > { %v445_v5 = vsel %vm232_vm0, %v436_v2, 0  ;;  %v369_v6 = vsel %vm232_vm0, %v358_v3, 0  ;;  %v1004_v2 = vld [vmem:[%s1216_s1 + $0x20] sm:$0xf] }
  0xa7   : > { %404 = vmatpush.bf16.msra.mxu0 %v369_v6  ;;  %470 = vmatpush.bf16.msra.mxu2 %v445_v5  ;;  %v304_v3 = vpop.f32.mrf.mxu3 }
  0xa8   : > { %978 = vmatmul.msk.bf16.vlgmr.msrb.gmra.mxu0 %vm228_vm1, %v201_v38  ;;  %979 = vmatmul.msk.bf16.vlgmr.msrb.gmra.mxu1 %vm228_vm1, %v201_v38 }
  0xaa   : > { %981 = vmatmul.msk.bf16.vlgmr.msrb.gmra.mxu2 %vm228_vm1, %v980_v62 }
  0xac   : > { %v427_v7 = vpop.permute.xlu1 %426 }
  0xad   : > { %v435_v8 = vsel %vm434_vm4, %v427_v7, %v429_v0  ;;  %v510_v9 = vpop.permute.xlu0 %509  ;;  %v587_v10 = vpop.permute.xlu2 %586 }
  0xae   : > { %v442_v11 = vsel %vm232_vm0, %v435_v8, 0 }
  0xaf   : > { %457 = vmatpush.bf16.msra.mxu1 %v442_v11  ;;  %v306_v5 = vpop.f32.mrf.mxu3 }
  0xb2   : > { %987 = vmatmul.msk.bf16.vlgmr.msra.gmra.mxu3 %vm228_vm1, %v984_v12 }
  0xb4   : > { %v512_v13 = vpop.permute.xlu1 %511 }
  0xb5   : > { %v516_v14 = vsel %vm513_vm5, %v510_v9, %v512_v13  ;;  %v508_v15 = vpop.permute.xlu0 %507  ;;  %v589_v16 = vpop.permute.xlu2 %588 }
  0xb6   : > { %v527_v17 = vsel %vm232_vm0, %v516_v14, 0  ;;  %v515_v18 = vsel %vm513_vm5, %v508_v15, %v510_v9  ;;  %v514_v19 = vsel %vm513_vm5, %v506_v4, %v508_v15  ;;  %v594_v20 = vsel %vm592_vm6, %v587_v10, %v589_v16  ;;  %v199_v4 = vld [vmem:[%s1217_s2] sm:$0xff] }
  0xb7   : > { %v524_v21 = vsel %vm232_vm0, %v515_v18, 0  ;;  %v521_v22 = vsel %vm232_vm0, %v514_v19, 0  ;;  %562 = vmatpush.bf16.msrb.mxu2 %v527_v17  ;;  %v603_v23 = vsel %vm232_vm0, %v594_v20, 0  ;;  %889 = vperm.xlu2 %1029, %v199_v4  }
  0xb8   : > { %549 = vmatpush.bf16.msrb.mxu1 %v524_v21  ;;  %983 = vmatmul.msk.bf16.vlgmr.msra.gmra.mxu0 %vm228_vm1, %v980_v62 }
  0xb9   : > { %985 = vmatmul.msk.bf16.vlgmr.msra.gmra.mxu1 %vm228_vm1, %v984_v12  ;;  %536 = vmatpush.bf16.msrb.mxu0 %v521_v22 }
  0xba   : > { %986 = vmatmul.msk.bf16.vlgmr.msra.gmra.mxu2 %vm228_vm1, %v984_v12 }
  0xbc   : > { %v585_v24 = vpop.permute.xlu1 %584 }
  0xbd   : > { %628 = vmatpush.bf16.msra.mxu0 %v603_v23  ;;  %v593_v25 = vsel %vm592_vm6, %v585_v24, %v587_v10  ;;  %v745_v26 = vpop.permute.xlu2 %744 }
  0xbe   : > { %v600_v27 = vsel %vm232_vm0, %v593_v25, 0 }
  0xbf   : > { %v664_v28 = vpop.permute.xlu0 %663  ;;  %615 = vmatpush.bf16.msrb.mxu3 %v600_v27 }
  0xc2   : > { %993 = vmatmul.msk.bf16.vlgmr.msrb.gmra.mxu3 %vm228_vm1, %v992_v29 }
  0xc4   : > { %v666_v30 = vpop.permute.xlu1 %665 }
  0xc5   : > { %v672_v31 = vsel %vm671_vm7, %v664_v28, %v666_v30  ;;  %v743_v33 = vpop.permute.xlu2 %742 }
  0xc6   : > { %v679_v34 = vsel %vm232_vm0, %v672_v31, 0  ;;  %v751_v35 = vsel %vm750_vm8, %v743_v33, %v745_v26 }
  0xc7   : > { %v591_v36 = vpop.permute.xlu0 %590  ;;  %694 = vmatpush.bf16.msra.mxu2 %v679_v34  ;;  %v758_v38 = vsel %vm232_vm0, %v751_v35, 0 }
  0xc8   : > { %v595_v37 = vsel %vm592_vm6, %v589_v16, %v591_v36  ;;  %989 = vmatmul.msk.bf16.vlgmr.msrb.gmra.mxu0 %vm228_vm1, %v988_v32 }
  0xc9   : > { %v606_v39 = vsel %vm232_vm0, %v595_v37, 0  ;;  %990 = vmatmul.msk.bf16.vlgmr.msrb.gmra.mxu1 %vm228_vm1, %v988_v32 }
  0xca   : > { %991 = vmatmul.msk.bf16.vlgmr.msrb.gmra.mxu2 %vm228_vm1, %v988_v32  ;;  %641 = vmatpush.bf16.msra.mxu1 %v606_v39 }
  0xcc   : > { %v668_v40 = vpop.permute.xlu1 %667 }
  0xcd   : > { %v673_v41 = vsel %vm671_vm7, %v666_v30, %v668_v40  ;;  %v828_v54 = vpop.permute.xlu2 %827 }
  0xce   : > { %773 = vmatpush.bf16.msrb.mxu1 %v758_v38  ;;  %v682_v42 = vsel %vm232_vm0, %v673_v41, 0 }
  0xcf   : > { %v747_v43 = vpop.permute.xlu0 %746  ;;  %707 = vmatpush.bf16.msra.mxu3 %v682_v42 }
  0xd0   : > { %v752_v45 = vsel %vm750_vm8, %v745_v26, %v747_v43 }
  0xd1   : > { %v761_v46 = vsel %vm232_vm0, %v752_v45, 0 }
  0xd2   : > { %998 = vmatmul.msk.bf16.vlgmr.msra.gmra.mxu3 %vm228_vm1, %v996_v44  ;;  %786 = vmatpush.bf16.msrb.mxu2 %v761_v46 }
  0xd4   : > { %v670_v47 = vpop.permute.xlu1 %669 }
  0xd5   : > { %v674_v48 = vsel %vm671_vm7, %v668_v40, %v670_v47 }
  0xd6   : > { %v685_v49 = vsel %vm232_vm0, %v674_v48, 0 }
  0xd7   : > { %v749_v50 = vpop.permute.xlu0 %748  ;;  %720 = vmatpush.bf16.msrb.mxu0 %v685_v49 }
  0xd8   : > { %v753_v51 = vsel %vm750_vm8, %v747_v43, %v749_v50  ;;  %994 = vmatmul.msk.bf16.vlgmr.msra.gmra.mxu0 %vm228_vm1, %v992_v29 }
  0xd9   : > { %v764_v52 = vsel %vm232_vm0, %v753_v51, 0  ;;  %995 = vmatmul.msk.bf16.vlgmr.msra.gmra.mxu1 %vm228_vm1, %v992_v29 }
  0xda   : > { %997 = vmatmul.msk.bf16.vlgmr.msra.gmra.mxu2 %vm228_vm1, %v996_v44  ;;  %799 = vmatpush.bf16.msrb.mxu3 %v764_v52 }
  0xdc   : > { %v826_v56 = vpop.permute.xlu1 %825 }
  0xdd   : > { %v832_v57 = vsel %vm829_vm9, %v826_v56, %v828_v54 }
  0xde   : > { %v843_v58 = vsel %vm232_vm0, %v832_v57, 0 }
  0xdf   : > { %878 = vmatpush.bf16.msra.mxu2 %v843_v58  ;;  %v822_v60 = vpop.permute.xlu0 %821 }
  0xe2   : > { %1003 = vmatmul.msk.bf16.vlgmr.msrb.gmra.mxu3 %vm228_vm1, %v1000_v59 }
  0xe4   : > { %v824_v61 = vpop.permute.xlu1 %823 }
  0xe5   : > { %v831_v62 = vsel %vm829_vm9, %v824_v61, %v826_v56  ;;  %v830_v63 = vsel %vm829_vm9, %v822_v60, %v824_v61 }
  0xe6   : > { %v840_v0 = vsel %vm232_vm0, %v831_v62, 0  ;;  %v837_v1 = vsel %vm232_vm0, %v830_v63, 0 }
  0xe7   : > { %865 = vmatpush.bf16.msra.mxu1 %v840_v0  ;;  %852 = vmatpush.bf16.msra.mxu0 %v837_v1 }
  0xe8   : > { %999 = vmatmul.msk.bf16.vlgmr.msrb.gmra.mxu0 %vm228_vm1, %v996_v44 }
  0xe9   : > { %1001 = vmatmul.msk.bf16.vlgmr.msrb.gmra.mxu1 %vm228_vm1, %v1000_v59 }
  0xea   : > { %1002 = vmatmul.msk.bf16.vlgmr.msrb.gmra.mxu2 %vm228_vm1, %v1000_v59 }
  0xf8   : > { %1005 = vmatmul.msk.bf16.vlgmr.msra.gmra.mxu0 %vm228_vm1, %v1004_v2 }
  0xf9   : > { %1006 = vmatmul.msk.bf16.vlgmr.msra.gmra.mxu1 %vm228_vm1, %v1004_v2 }
  0xfa   : > { %1007 = vmatmul.msk.bf16.vlgmr.msra.gmra.mxu2 %vm228_vm1, %v1004_v2 }
 0x114   : > { %v251_v6 = vpop.f32.mrf.mxu0  ;;  %v264_v7 = vpop.f32.mrf.mxu1 }
 0x115   : > { %v305_v8 = vadd.f32 %v304_v3, %v251_v6 }
 0x11c   : > { %v253_v10 = vpop.f32.mrf.mxu0  ;;  %v266_v11 = vpop.f32.mrf.mxu1 }
 0x11d   : > { %v277_v9 = vpop.f32.mrf.mxu2 }
 0x125   : > { %v279_v12 = vpop.f32.mrf.mxu2  ;;  %v317_v13 = vpop.f32.mrf.mxu0 }
 0x126   : > { %v330_v14 = vpop.f32.mrf.mxu1  ;;  %v318_v15 = vadd.f32 %v317_v13, %v264_v7  ;;  %v393_v17 = vpop.f32.mrf.mxu3 }
 0x127   : > { %v331_v16 = vadd.f32 %v330_v14, %v277_v9  ;;  %v898_v13 = vpop.permute.xlu0 %897 }
 0x128   : > { %v411_v18 = vadd.f32 %v393_v17, %v318_v15 }
 0x12d   : > { %v380_v19 = vpop.f32.mrf.mxu2  ;;  %v319_v20 = vpop.f32.mrf.mxu0 }
 0x12e   : > { %v332_v21 = vpop.f32.mrf.mxu1  ;;  %v395_v22 = vpop.f32.mrf.mxu3  ;;  %v410_v51 = vadd.f32 %v380_v19, %v305_v8 }
 0x12f   : > { %v890_v8 = vpop.permute.xlu2 %889 }
 0x135   : > { %v382_v23 = vpop.f32.mrf.mxu2  ;;  %v406_v24 = vpop.f32.mrf.mxu0 }
 0x136   : > { %v459_v25 = vpop.f32.mrf.mxu1  ;;  %v485_v26 = vpop.f32.mrf.mxu3  ;;  %v412_v56 = vadd.f32 %v406_v24, %v331_v16 }
 0x137   : > { %v489_v52 = vadd.f32 %v459_v25, %v410_v51 }
 0x138   : > { %v491_v63 = vadd.f32 %v485_v26, %v412_v56 }
 0x13d   : > { %v472_v27 = vpop.f32.mrf.mxu2  ;;  %v408_v28 = vpop.f32.mrf.mxu0 }
 0x13e   : > { %v461_v29 = vpop.f32.mrf.mxu1  ;;  %v487_v30 = vpop.f32.mrf.mxu3  ;;  %v490_v53 = vadd.f32 %v472_v27, %v411_v18 }
 0x145   : > { %v474_v31 = vpop.f32.mrf.mxu2  ;;  %v538_v32 = vpop.f32.mrf.mxu0 }
 0x146   : > { %v551_v33 = vpop.f32.mrf.mxu1  ;;  %v617_v34 = vpop.f32.mrf.mxu3  ;;  %v568_v54 = vadd.f32 %v538_v32, %v489_v52 }
 0x147   : > { %v569_v57 = vadd.f32 %v551_v33, %v490_v53 }
 0x148   : > { %v647_v62 = vadd.f32 %v617_v34, %v568_v54 }
 0x14d   : > { %v564_v35 = vpop.f32.mrf.mxu2  ;;  %v540_v36 = vpop.f32.mrf.mxu0 }
 0x14e   : > { %v553_v37 = vpop.f32.mrf.mxu1  ;;  %v619_v38 = vpop.f32.mrf.mxu3  ;;  %v570_v1 = vadd.f32 %v564_v35, %v491_v63 }
 0x155   : > { %v566_v39 = vpop.f32.mrf.mxu2  ;;  %v630_v40 = vpop.f32.mrf.mxu0 }
 0x156   : > { %v643_v41 = vpop.f32.mrf.mxu1  ;;  %v709_v42 = vpop.f32.mrf.mxu3  ;;  %v648_v61 = vadd.f32 %v630_v40, %v569_v57 }
 0x157   : > { %v649_v5 = vadd.f32 %v643_v41, %v570_v1 }
 0x158   : > { %v727_v2 = vadd.f32 %v709_v42, %v648_v61 }
 0x15d   : > { %v696_v43 = vpop.f32.mrf.mxu2  ;;  %v632_v44 = vpop.f32.mrf.mxu0 }
 0x15e   : > { %v645_v45 = vpop.f32.mrf.mxu1  ;;  %v711_v46 = vpop.f32.mrf.mxu3  ;;  %v726_v0 = vadd.f32 %v696_v43, %v647_v62 }
 0x165   : > { %v698_v47 = vpop.f32.mrf.mxu2  ;;  %v722_v48 = vpop.f32.mrf.mxu0 }
 0x166   : > { %v775_v49 = vpop.f32.mrf.mxu1  ;;  %v801_v50 = vpop.f32.mrf.mxu3  ;;  %v728_v11 = vadd.f32 %v722_v48, %v649_v5 }
 0x167   : > { %v805_v3 = vadd.f32 %v775_v49, %v726_v0 }
 0x168   : > { %v807_v17 = vadd.f32 %v801_v50, %v728_v11 }
 0x16d   : > { %v788_v55 = vpop.f32.mrf.mxu2  ;;  %v724_v58 = vpop.f32.mrf.mxu0 }
 0x16e   : > { %v777_v59 = vpop.f32.mrf.mxu1  ;;  %v803_v60 = vpop.f32.mrf.mxu3  ;;  %v806_v6 = vadd.f32 %v788_v55, %v727_v2 }
 0x175   : > { %v790_v4 = vpop.f32.mrf.mxu2  ;;  %v854_v7 = vpop.f32.mrf.mxu0 }
 0x176   : > { %v884_v9 = vadd.f32 %v854_v7, %v805_v3  ;;  %v867_v10 = vpop.f32.mrf.mxu1 }
 0x177   : > { %v885_v12 = vadd.f32 %v867_v10, %v806_v6 }
 0x178   : > { %v892_v14 = vmul.f32 %v890_v8, %v884_v9 }
 0x179   : > { %v893_v15 = vmul.f32 %v890_v8, %v885_v12 }
 0x17a   : > { %v900_v16 = vadd.f32 %v898_v13, %v892_v14 }
 0x17b   : > { %v901_v18 = vadd.f32 %v898_v13, %v893_v15 }
 0x17c   : > { %v903_v19 = vmax.f32 %v900_v16, 0.0 }
 0x17d   : > { %v880_v20 = vpop.f32.mrf.mxu2  ;;  %v904_v21 = vmax.f32 %v901_v18, 0.0  ;;  %v856_v23 = vpop.f32.mrf.mxu0 }
 0x17e   : > { %v886_v22 = vadd.f32 %v880_v20, %v807_v17  ;;  %v869_v24 = vpop.f32.mrf.mxu1 }
 0x17f   : > { %v906_v25 = vpack.c.bf16 %v904_v21, %v903_v19 }
 0x180   : > { %v894_v26 = vmul.f32 %v890_v8, %v886_v22 }
 0x181   : > { %908 = vst [vmem:[%s197_s30] sm:$0xff] %v906_v25 }
 0x182   : > { %v902_v27 = vadd.f32 %v898_v13, %v894_v26 }
 0x184   : > { %v905_v28 = vmax.f32 %v902_v27, 0.0 }
 0x185   : > { %v882_v29 = vpop.f32.mrf.mxu2 }
 0x186   : > { %v907_v30 = vpack.c.bf16 %v905_v28, %v905_v28 }
 0x188   : > { %909 = vst [vmem:[%s197_s30 + $0x8] sm:$0xf] %v907_v30 }
 0x189 PF: > { %s14_s15 = sadd.s32 1, %s1037_s15  }
 0x18a   : > { %p11_p4 = scmp.ge.s32.totalorder %s14_s15, 4  }
 0x18c   :  { %13 = sbr.rel (!%p11_p4) target bundleno = 1 (0x1), region = 74 }

</bundles_post_ra>
